<compile_context>
chip_gen: v7x
topology: tpu7x:2x2x1
jax: 0.10.0
libtpu: 0.0.40
codegen_flags: <defaults>
</compile_context>

<pallas_src>
import jax
import jax.numpy as jnp
from jax.experimental import pallas as pl
from jax.experimental.pallas import tpu as pltpu


def _round_up(x, m):
    return ((x + m - 1) // m) * m


def _pad_last(a, target):
    pad = target - a.shape[-1]
    if pad == 0:
        return a
    cfg = [(0, 0)] * (a.ndim - 1) + [(0, pad)]
    return jnp.pad(a, cfg)


def _pad_axis(a, axis, target):
    pad = target - a.shape[axis]
    if pad == 0:
        return a
    cfg = [(0, 0)] * a.ndim
    cfg[axis] = (0, pad)
    return jnp.pad(a, cfg)


# ---------------------------------------------------------------------------
# Stage 1: per adjacency-row-block, compute
#   t_block = relu(adj_block @ (x @ W1^T + b1)) @ W2^T
# (h1 = x @ W1^T + b1 is recomputed per row block; at these sizes it is a tiny
#  F x U matmul — split it into its own row-parallel call if F*U ever grows.)
# ---------------------------------------------------------------------------
def _stage1_kernel(x_ref, adj_ref, w1t_ref, b1_ref, w2t_ref, t_ref):
    # x_ref  : (1, N, F_pad)       bf16  (full node features of this graph)
    # adj_ref: (1, TM, N)          bf16  (row block of the adjacency)
    # w1t_ref: (F_pad, U_pad)      bf16
    # b1_ref : (1, U_pad)          f32
    # w2t_ref: (U_pad, L_pad)      bf16
    # t_ref  : (1, TM, L_pad)      bf16  (output row block of t)
    h1 = jnp.dot(x_ref[0], w1t_ref[...], preferred_element_type=jnp.float32)
    h1 = (h1 + b1_ref[...]).astype(jnp.bfloat16)                    # (N, U_pad)
    h2 = jnp.dot(adj_ref[0], h1, preferred_element_type=jnp.float32)  # (TM, U_pad)
    h3 = jnp.maximum(h2, 0.0).astype(jnp.bfloat16)
    t = jnp.dot(h3, w2t_ref[...], preferred_element_type=jnp.float32)  # (TM, L_pad)
    t_ref[0] = t.astype(t_ref.dtype)


# ---------------------------------------------------------------------------
# Stage 2: per adjacency-row-block, compute  out_block = adj_block @ t + b2
# ---------------------------------------------------------------------------
def _stage2_kernel(adj_ref, t_ref, b2_ref, out_ref):
    # adj_ref: (1, TM, N)      bf16
    # t_ref  : (1, N, L_pad)   bf16  (full projected/propagated features)
    # b2_ref : (1, L_pad)      f32
    # out_ref: (1, TM, L_pad)  f32
    out = jnp.dot(adj_ref[0], t_ref[0], preferred_element_type=jnp.float32)
    out_ref[0] = (out + b2_ref[...]).astype(out_ref.dtype)


def cora_gnn_forward_batched(x, adj, w1, b1, w2, b2, *, row_block=None):
    """x: [B, N, F], adj: [B, N, N], w1: [U, F], b1: [U], w2: [L, U], b2: [L]."""
    B, N, F = x.shape
    U = w1.shape[0]
    L = w2.shape[0]

    F_pad = _round_up(F, 128)
    U_pad = _round_up(U, 128)
    L_pad = _round_up(L, 128)

    if row_block is None:
        row_block = 64 if (N >= 64 and N % 64 == 0) else N
    assert N % row_block == 0 and row_block % 8 == 0, "row_block must tile N"
    G = N // row_block

    # bf16 ingest (adj dominates HBM->VMEM bytes and VMEM footprint);
    # MXU dots accumulate in f32, biases stay f32, padding is zeros (inert).
    x_p = _pad_last(jnp.asarray(x, jnp.float32), F_pad).astype(jnp.bfloat16)
    adj_b = jnp.asarray(adj, jnp.float32).astype(jnp.bfloat16)
    w1t = _pad_axis(
        _pad_last(jnp.asarray(w1, jnp.float32).T, U_pad), 0, F_pad
    ).astype(jnp.bfloat16)                                   # (F_pad, U_pad)
    w2t = _pad_axis(
        _pad_last(jnp.asarray(w2, jnp.float32).T, L_pad), 0, U_pad
    ).astype(jnp.bfloat16)                                   # (U_pad, L_pad)
    b1_p = _pad_last(jnp.asarray(b1, jnp.float32).reshape(1, U), U_pad)
    b2_p = _pad_last(jnp.asarray(b2, jnp.float32).reshape(1, L), L_pad)

    parallel2 = pltpu.CompilerParams(
        dimension_semantics=("parallel", "parallel"),
    )

    # Stage 1: t = relu(adj @ (x W1^T + b1)) @ W2^T   (row-block parallel)
    t = pl.pallas_call(
        _stage1_kernel,
        out_shape=jax.ShapeDtypeStruct((B, N, L_pad), jnp.bfloat16),
        grid_spec=pl.GridSpec(
            grid=(B, G),
            in_specs=[
                pl.BlockSpec((1, N, F_pad), lambda b, g: (b, 0, 0)),
                pl.BlockSpec((1, row_block, N), lambda b, g: (b, g, 0)),
                pl.BlockSpec((F_pad, U_pad), lambda b, g: (0, 0)),
                pl.BlockSpec((1, U_pad), lambda b, g: (0, 0)),
                pl.BlockSpec((U_pad, L_pad), lambda b, g: (0, 0)),
            ],
            out_specs=pl.BlockSpec((1, row_block, L_pad), lambda b, g: (b, g, 0)),
        ),
        compiler_params=parallel2,
    )(x_p, adj_b, w1t, b1_p, w2t)

    # Stage 2: out = adj @ t + b2   (row-block parallel, width L_pad only)
    out_pad = pl.pallas_call(
        _stage2_kernel,
        out_shape=jax.ShapeDtypeStruct((B, N, L_pad), jnp.float32),
        grid_spec=pl.GridSpec(
            grid=(B, G),
            in_specs=[
                pl.BlockSpec((1, row_block, N), lambda b, g: (b, g, 0)),
                pl.BlockSpec((1, N, L_pad), lambda b, g: (b, 0, 0)),
                pl.BlockSpec((1, L_pad), lambda b, g: (0, 0)),
            ],
            out_specs=pl.BlockSpec((1, row_block, L_pad), lambda b, g: (b, g, 0)),
        ),
        compiler_params=parallel2,
    )(adj_b, t, b2_p)

    return out_pad[:, :, :L]


def cora_gnn_forward(input_x, adj, w1, b1, w2, b2):
    """Single-graph interface matching the PyTorch module signature."""
    return cora_gnn_forward_batched(input_x[None], adj[None], w1, b1, w2, b2)[0]


# ---------------------------------------------------------------------------
# References
# ---------------------------------------------------------------------------
def _reference_forward(x, adj, w1, b1, w2, b2):
    h = x @ w1.T + b1
    h = adj @ h
    h = jnp.maximum(h, 0.0)
    h = adj @ h
    return h @ w2.T + b2


def _reference_forward_bf16(x, adj, w1, b1, w2, b2):
    # Same bf16-ingest / f32-accumulate semantics as the kernel pipeline.
    bf = lambda a: a.astype(jnp.bfloat16).astype(jnp.float32)
    xq, adjq, w1q, w2q = bf(x), bf(adj), bf(w1), bf(w2)
    h1 = bf(xq @ w1q.T + b1)
    h2 = adjq @ h1
    h3 = bf(jnp.maximum(h2, 0.0))
    t = bf(h3 @ w2q.T)
    return adjq @ t + b2


if __name__ == "__main__":
    B = 2            # batch of graphs to amortize launch overhead / fill both TCs
    N = 128          # nodes per graph
    FEAT_LEN = 64    # input feature length
    UNITS = 32       # hidden units
    LBL_LEN = 8      # number of labels

    key = jax.random.PRNGKey(0)
    k_x, k_adj, k_w1, k_b1, k_w2, k_b2 = jax.random.split(key, 6)

    input_x = jax.random.normal(k_x, (B, N, FEAT_LEN), dtype=jnp.float32)
    # Symmetric, row-normalized dense adjacency.
    adj_raw = jax.random.uniform(k_adj, (B, N, N), dtype=jnp.float32)
    adj_sym = adj_raw + jnp.swapaxes(adj_raw, -1, -2)
    adj = adj_sym / jnp.sum(adj_sym, axis=-1, keepdims=True)

    # Deterministic parameters (shapes match nn.Linear(feat_len, units) etc.).
    w1 = jax.random.normal(k_w1, (UNITS, FEAT_LEN), dtype=jnp.float32) * 0.2
    b1 = jax.random.normal(k_b1, (UNITS,), dtype=jnp.float32) * 0.2
    w2 = jax.random.normal(k_w2, (LBL_LEN, UNITS), dtype=jnp.float32) * 0.2
    b2 = jax.random.normal(k_b2, (LBL_LEN,), dtype=jnp.float32) * 0.2

    out = cora_gnn_forward_batched(input_x, adj, w1, b1, w2, b2)
    out = jax.block_until_ready(out)
    assert out.shape == (B, N, LBL_LEN)

    # Tight check against the exact bf16-ingest semantics of the kernel.
    ref_bf16 = _reference_forward_bf16(input_x, adj, w1, b1, w2, b2)
    assert jnp.allclose(out, ref_bf16, atol=5e-3, rtol=5e-3), \
        "mismatch vs bf16-semantics reference"

    # Loose check against the full-f32 PyTorch-equivalent forward.
    ref_f32 = _reference_forward(input_x, adj, w1, b1, w2, b2)
    assert jnp.allclose(out, ref_f32, atol=2e-2, rtol=2e-2), \
        "mismatch vs f32 reference"

    # Single-graph interface agrees with the batched path.
    out0 = jax.block_until_ready(
        cora_gnn_forward(input_x[0], adj[0], w1, b1, w2, b2))
    assert jnp.allclose(out0, out[0], atol=1e-5, rtol=1e-5)

    print("KERNEL_OK")
</pallas_src>

<mosaic_0001>
module attributes {stable_mosaic.version = 11 : i64} {
  func.func @_stage1_kernel(%arg0: i32, %arg1: i32, %arg2: memref<1x128x128xbf16, #tpu.memory_space<vmem>>, %arg3: memref<1x64x128xbf16, #tpu.memory_space<vmem>>, %arg4: memref<128x128xbf16, #tpu.memory_space<vmem>>, %arg5: memref<1x128xf32, #tpu.memory_space<vmem>>, %arg6: memref<128x128xbf16, #tpu.memory_space<vmem>>, %arg7: memref<1x64x128xbf16, #tpu.memory_space<vmem>>) attributes {dimension_semantics = [#tpu.dimension_semantics<parallel>, #tpu.dimension_semantics<parallel>], iteration_bounds = array<i64: 2, 2>, scalar_prefetch = 0 : i64, scratch_operands = 0 : i64, tpu.core_type = #tpu.core_type<tc>, window_params = [{transform_indices = @transform_0, window_bounds = array<i64: 1, 128, 128>}, {transform_indices = @transform_1, window_bounds = array<i64: 1, 64, 128>}, {pipeline_mode = #tpu.pipeline_mode<synchronous>, transform_indices = @transform_2, window_bounds = array<i64: 128, 128>}, {pipeline_mode = #tpu.pipeline_mode<synchronous>, transform_indices = @transform_3, window_bounds = array<i64: 1, 128>}, {pipeline_mode = #tpu.pipeline_mode<synchronous>, transform_indices = @transform_4, window_bounds = array<i64: 128, 128>}, {transform_indices = @transform_5, window_bounds = array<i64: 1, 64, 128>}]} {
    %c0 = arith.constant 0 : index
    %c0_0 = arith.constant 0 : index
    %c0_1 = arith.constant 0 : index
    %0 = vector.load %arg2[%c0, %c0_0, %c0_1] : memref<1x128x128xbf16, #tpu.memory_space<vmem>>, vector<1x128x128xbf16>
    %1 = vector.shape_cast %0 : vector<1x128x128xbf16> to vector<128x128xbf16>
    %c0_2 = arith.constant 0 : index
    %c0_3 = arith.constant 0 : index
    %2 = vector.load %arg4[%c0_2, %c0_3] : memref<128x128xbf16, #tpu.memory_space<vmem>>, vector<128x128xbf16>
    %cst = arith.constant dense<0.000000e+00> : vector<128x128xf32>
    %3 = tpu.matmul %1, %2, %cst {dimension_numbers = #tpu.dot_dimension_numbers<[1], [0], [0], [1], [0, 0, 1, 1], [], []>} : vector<128x128xbf16>, vector<128x128xbf16>, vector<128x128xf32> -> vector<128x128xf32>
    %c0_4 = arith.constant 0 : index
    %c0_5 = arith.constant 0 : index
    %4 = vector.load %arg5[%c0_4, %c0_5] : memref<1x128xf32, #tpu.memory_space<vmem>>, vector<1x128xf32>
    %5 = vector.broadcast %4 : vector<1x128xf32> to vector<128x128xf32>
    %6 = arith.addf %3, %5 : vector<128x128xf32>
    %7 = arith.truncf %6 : vector<128x128xf32> to vector<128x128xbf16>
    %c0_6 = arith.constant 0 : index
    %c0_7 = arith.constant 0 : index
    %c0_8 = arith.constant 0 : index
    %8 = vector.load %arg3[%c0_6, %c0_7, %c0_8] : memref<1x64x128xbf16, #tpu.memory_space<vmem>>, vector<1x64x128xbf16>
    %9 = vector.shape_cast %8 : vector<1x64x128xbf16> to vector<64x128xbf16>
    %cst_9 = arith.constant dense<0.000000e+00> : vector<64x128xf32>
    %10 = tpu.matmul %9, %7, %cst_9 {dimension_numbers = #tpu.dot_dimension_numbers<[1], [0], [0], [1], [0, 0, 1, 1], [], []>} : vector<64x128xbf16>, vector<128x128xbf16>, vector<64x128xf32> -> vector<64x128xf32>
    %cst_10 = arith.constant 0.000000e+00 : f32
    %11 = vector.broadcast %cst_10 : f32 to vector<64x128xf32>
    %12 = arith.maximumf %10, %11 : vector<64x128xf32>
    %13 = arith.truncf %12 : vector<64x128xf32> to vector<64x128xbf16>
    %c0_11 = arith.constant 0 : index
    %c0_12 = arith.constant 0 : index
    %14 = vector.load %arg6[%c0_11, %c0_12] : memref<128x128xbf16, #tpu.memory_space<vmem>>, vector<128x128xbf16>
    %cst_13 = arith.constant dense<0.000000e+00> : vector<64x128xf32>
    %15 = tpu.matmul %13, %14, %cst_13 {dimension_numbers = #tpu.dot_dimension_numbers<[1], [0], [0], [1], [0, 0, 1, 1], [], []>} : vector<64x128xbf16>, vector<128x128xbf16>, vector<64x128xf32> -> vector<64x128xf32>
    %16 = arith.truncf %15 : vector<64x128xf32> to vector<64x128xbf16>
    %c0_14 = arith.constant 0 : index
    %c0_15 = arith.constant 0 : index
    %c0_16 = arith.constant 0 : index
    %17 = vector.load %arg7[%c0_14, %c0_15, %c0_16] : memref<1x64x128xbf16, #tpu.memory_space<vmem>>, vector<1x64x128xbf16>
    %18 = vector.shape_cast %17 : vector<1x64x128xbf16> to vector<64x128xbf16>
    %19 = vector.shape_cast %16 : vector<64x128xbf16> to vector<1x64x128xbf16>
    tpu.vector_store %arg7[%c0_14, %c0_15, %c0_16], %19 {strides = array<i32>} : memref<1x64x128xbf16, #tpu.memory_space<vmem>>, vector<1x64x128xbf16>,
    return
  }
  func.func @transform_0(%arg0: i32, %arg1: i32) -> (i32, i32, i32) {
    %c0_i32 = arith.constant 0 : i32
    %c0_i32_0 = arith.constant 0 : i32
    %c0_i32_1 = arith.constant 0 : i32
    return %arg0, %c0_i32, %c0_i32_0 : i32, i32, i32
  }
  func.func @transform_1(%arg0: i32, %arg1: i32) -> (i32, i32, i32) {
    %c0_i32 = arith.constant 0 : i32
    %c0_i32_0 = arith.constant 0 : i32
    return %arg0, %arg1, %c0_i32 : i32, i32, i32
  }
  func.func @transform_2(%arg0: i32, %arg1: i32) -> (i32, i32) {
    %c0_i32 = arith.constant 0 : i32
    %c0_i32_0 = arith.constant 0 : i32
    %c0_i32_1 = arith.constant 0 : i32
    return %c0_i32, %c0_i32_0 : i32, i32
  }
  func.func @transform_3(%arg0: i32, %arg1: i32) -> (i32, i32) {
    %c0_i32 = arith.constant 0 : i32
    %c0_i32_0 = arith.constant 0 : i32
    %c0_i32_1 = arith.constant 0 : i32
    return %c0_i32, %c0_i32_0 : i32, i32
  }
  func.func @transform_4(%arg0: i32, %arg1: i32) -> (i32, i32) {
    %c0_i32 = arith.constant 0 : i32
    %c0_i32_0 = arith.constant 0 : i32
    %c0_i32_1 = arith.constant 0 : i32
    return %c0_i32, %c0_i32_0 : i32, i32
  }
  func.func @transform_5(%arg0: i32, %arg1: i32) -> (i32, i32, i32) {
    %c0_i32 = arith.constant 0 : i32
    %c0_i32_0 = arith.constant 0 : i32
    return %arg0, %arg1, %c0_i32 : i32, i32, i32
  }
}

</mosaic_0001>

<bundles_post_ra>
// kernel: tpu_custom_call.1
= control target key start
LH: loop header
LB: loop body
LE: loop exit
PB: predicated region body
PF: predicated region fallthrough
CT: control target
= control target key end

     0   :  { %s2118_s0 = inlined_call_operand.hbm [shape: bf16[2,128,128], index: 0, kind: input, shape index: {}]   ;;  %s2119_s1 = inlined_call_operand.hbm [shape: bf16[2,128,128], index: 1, kind: input, shape index: {}]   ;;  %s2120_s2 = inlined_call_operand.hbm [shape: bf16[128,128], index: 2, kind: input, shape index: {}]   ;;  %s2121_s3 = inlined_call_operand.vmem [shape: f32[1,128], index: 3, kind: input, shape index: {}]   ;;  %s2122_s4 = inlined_call_operand.hbm [shape: bf16[128,128], index: 4, kind: input, shape index: {}]   ;;  %s2123_s5 = inlined_call_operand.hbm [shape: bf16[2,128,128], index: 5, kind: output, shape index: {}]  }
   0x1   :  { %2140 = sst [smem:[#allocation23_spill]] %s2118_s0 }
   0x2   :  { %2141 = sst [smem:[#allocation24_spill]] %s2120_s2 }
   0x3   :  { %2142 = sst [smem:[#allocation25_spill]] %s2121_s3 }
   0x4   :  { %2143 = sst [smem:[#allocation26_spill]] %s2122_s4 }
   0x5   :  { %2144 = sst [smem:[#allocation27_spill]] %s2123_s5 }
   0x6   :  { %10 = vsyncpa [#allocation3], 0 }
   0x7   :  { %12 = vsyncpa [#allocation3 + $0x1], 0 }
   0x8   :  { %13 = vsyncpa [#allocation6], 0 }
   0x9   :  { %15 = vsyncpa [#allocation6 + $0x1], 0 }
   0xa   :  { %16 = vsyncpa [#allocation9], 0 }
   0xb   :  { %17 = vsyncpa [#allocation4], 0 }
   0xc   :  { %19 = vsyncpa [#allocation4 + $0x1], 0  ;;  %s1680_s18 = smov 0   ;;  %s1682_s19 = smov 0  }
   0xd   :  { %s1684_s20 = smov 0   ;;  %s1686_s21 = smov 0  }
   0xe   :  { %s1688_s22 = smov 0   ;;  %s1690_s23 = smov 0  }
   0xf   :  { %s1692_s24 = smov 0   ;;  %s1694_s25 = smov 0  }
  0x10   :  { %s1696_s26 = smov 0   ;;  %s1698_s27 = smov 0  }
  0x11   :  { %s1700_s28 = smov 0  }
  0x12 LB: > { %2145 = sst [smem:[#allocation16_spill]] %s1599_s18  ;;  %s1734_s29 = sadd.s32 4294967295, %s1639_s28   ;;  %s1639_s28 = sphi %s1700_s28, %s25_s28   ;;  %s1635_s27 = sphi %s1698_s27, %s2195_s27   ;;  %s1631_s26 = sphi %s1696_s26, %s2194_s26   ;;  %s1627_s25 = sphi %s1694_s25, %s2193_s25   ;;  %s1623_s24 = sphi %s1692_s24, %s2192_s24   ;;  %s1619_s23 = sphi %s1690_s23, %s2191_s23   ;;  %s1615_s22 = sphi %s1688_s22, %s2190_s22   ;;  %s1611_s21 = sphi %s1686_s21, %s2189_s21   ;;  %s1607_s20 = sphi %s1684_s20, %s2188_s20   ;;  %s1603_s19 = sphi %s1682_s19, %s2187_s19   ;;  %s1599_s18 = sphi %s1680_s18, %s2186_s18  }
  0x13   : > { %2146 = sst [smem:[#allocation17_spill]] %s1623_s24  ;;  %s1000_s30 = sadd.s32 4294967294, %s1639_s28  }
  0x14   : > { %2147 = sst [smem:[#allocation18_spill]] %s1627_s25  ;;  %p57_p0 = scmp.ne.s32.totalorder %s1615_s22, %s1611_s21 }
  0x15   : > { %p2125_p1 = scmp.eq.s32.totalorder %s1734_s29, 0  ;;  %p85_p2 = scmp.ne.s32.totalorder %s1603_s19, %s1599_s18 }
  0x16   : > { %p180_p4 = scmp.eq.s32.totalorder %s1000_s30, 3  ;;  %p1001_p6 = scmp.ge.s32.totalorder %s1639_s28, 1 }
  0x17   : > { %p1743_p3 = por %p2125_p1, %p57_p0  ;;  %p1749_p5 = por %p85_p2, %p2125_p1 }
  0x18   : > { %p1754_p7 = por %p180_p4, %p85_p2  ;;  %p187_p8 = scmp.lt.s32.totalorder %s1639_s28, 5 }
  0x19   : > { %s2148_s6 = scalar_select %p1743_p3, 1, 0 }
  0x1a   : > { %s2149_s7 = scalar_select %p1749_p5, 1, 0 }
  0x1b   : > { %s2151_s8 = scalar_select %p1754_p7, 1, 0 }
  0x1c   : > { %2150 = sst [smem:[#allocation19_spill]] %s2149_s7  ;;  %p1759_p9 = pnand %p1001_p6, %p187_p8 }
  0x1d   : > { %2152 = sst [smem:[#allocation20_spill]] %s2151_s8  ;;  %s1641_s10 = smov [#allocation7]  }
  0x1e   : > { %s2153_s9 = scalar_select %p1759_p9, 1, 0 }
  0x1f   : > { %s199_s11 = sshll.u32 %s1641_s10, 4  ;;  %p1243_p10 = pneg %p1759_p9  ;;  %s200_s11 = int_to_ptr.vmem [resolvable:$true] %s199_s11 }
  0x20   : > { %s1642_s13 = smov [#allocation8]   ;;  %s2155_s2 = sld [smem:[#allocation24_spill]] }
  0x21   : > { %p1767_p11 = pnand %p1243_p10, %p2125_p1  ;;  %s215_s14 = sshll.u32 %s1642_s13, 4  ;;  %s1771_s14 = int_to_ptr.vmem [resolvable:$true] %s215_s14 }
  0x23   : > { %p1391_p13 = pneg %p1767_p11 }
  0x26   : > { %s1389_s17 = scalar_lea.hbm %s2155_s2, 1024 }
  0x27   : > { %p1390_p12 = scmp.ne.s32.totalorder %s2155_s2, %s1389_s17  ;;  %p1396_p4 = scmp.lt.u32.totalorder %s1389_s17, %s2155_s2 }
  0x29   : > { %p1392_p0 = pnand %p1391_p13, %p1390_p12 }
  0x2b   : > { %p1393_p2 = pneg %p1392_p0 }
  0x2d   : > { %p1398_p6 = pnand %p1396_p4, %p1393_p2 }
  0x2f   : > { %1401 = shalt.err (!%p1398_p6)
}
  0x30   : > { %s1402_s13 = scalar_lea.vmem %s200_s11, 1024  ;;  %p1410_p7 = scmp.lt.s32.totalorder %s200_s11, %s200_s11 }
  0x31   : > { %p1403_p8 = scmp.ne.s32.totalorder %s200_s11, %s1402_s13  ;;  %p1411_p5 = scmp.lt.s32.totalorder %s1402_s13, %s1402_s13 }
  0x33   : > { %p1405_p10 = pnand %p1403_p8, %p1391_p13  ;;  %p1412_p3 = por %p1411_p5, %p1410_p7 }
  0x35   : > { %p1406_p1 = pneg %p1405_p10 }
  0x37   : > { %p1413_p9 = pnand %p1412_p3, %p1406_p1 }
  0x39   : > { %1416 = shalt.err (!%p1413_p9)
}
  0x3a   : > { %s2133_s15 = smov 64   ;;  %s2134_s16 = smov 4  }
  0x3b   : > { %1246 = dma.hbm_to_vmem [thread:$0]  (!%p1767_p11), %s2155_s2, 1024, %s200_s11, [#allocation6], %s2133_s15, %s2133_s15, %s2134_s16  }
  0x3c   : > { %s2156_s4 = sld [smem:[#allocation26_spill]] }
  0x42   : > { %s1417_s10 = scalar_lea.hbm %s2156_s4, 1024 }
  0x43   : > { %p1418_p1 = scmp.ne.s32.totalorder %s2156_s4, %s1417_s10  ;;  %p1424_p7 = scmp.lt.u32.totalorder %s1417_s10, %s2156_s4 }
  0x45   : > { %p1420_p3 = pnand %p1418_p1, %p1391_p13 }
  0x47   : > { %p1421_p5 = pneg %p1420_p3 }
  0x49   : > { %p1426_p9 = pnand %p1424_p7, %p1421_p5 }
  0x4b   : > { %1429 = shalt.err (!%p1426_p9)
}
  0x4c   : > { %s1430_s11 = scalar_lea.vmem %s1771_s14, 1024  ;;  %p1438_p4 = scmp.lt.s32.totalorder %s1771_s14, %s1771_s14 }
  0x4d   : > { %p1431_p12 = scmp.ne.s32.totalorder %s1771_s14, %s1430_s11  ;;  %p1439_p6 = scmp.lt.s32.totalorder %s1430_s11, %s1430_s11 }
  0x4f   : > { %p1433_p0 = pnand %p1431_p12, %p1391_p13  ;;  %p1440_p8 = por %p1439_p6, %p1438_p4 }
  0x51   : > { %p1434_p2 = pneg %p1433_p0 }
  0x53   : > { %p1441_p10 = pnand %p1440_p8, %p1434_p2 }
  0x55   : > { %1444 = shalt.err (!%p1441_p10)
}
  0x56   : > { %1249 = dma.hbm_to_vmem [thread:$0]  (!%p1767_p11), %s2156_s4, 1024, %s1771_s14, [#allocation9], %s2133_s15, %s2133_s15, %s2134_s16  }
  0x57   : > { %p174_p13 = scmp.eq.s32.totalorder %s1734_s29, 3  ;;  %s37_s25 = sadd.s32 1, %s1635_s27 }
  0x58   : > { %p51_p1 = scmp.ne.s32.totalorder %s1619_s23, %s1615_s22  ;;  %p2132_p3 = scmp.eq.s32.totalorder %s1639_s28, 0 }
  0x59   : > { %p2131_p5 = scmp.lt.s32.totalorder %s1639_s28, 4  ;;  %s229_s12 = sand.u32 1, %s1619_s23  }
  0x5a   : > { %p53_p7 = por %p2132_p3, %p51_p1  ;;  %s1005_s8 = sshll.u32 %s229_s12, 6 }
  0x5b   : > { %s1061_s17 = sshll.u32 %s1635_s27, 10  ;;  %s2157_s0 = sld [smem:[#allocation23_spill]] }
  0x5c   : > { %s233_s14 = scalar_lea.vmem [#allocation2], %s1005_s8  ;;  %p1843_p11 = pnand %p2131_p5, %p53_p7 }
  0x5d   : > { %s240_s13 = sshll.u32 %s233_s14, 4  ;;  %s1849_s5 = scalar_lea.sflag [#allocation3], %s229_s12  ;;  %s1847_s13 = int_to_ptr.vmem [resolvable:$true] %s240_s13 }
  0x5e   : > { %p1447_p12 = pneg %p1843_p11 }
  0x61   : > { %s1839_s10 = scalar_lea.hbm %s2157_s0, %s1061_s17  ;;  %s1450_s21 = scalar_lea.hbm %s2157_s0, 2048 }
  0x62   : > { %s1445_s18 = scalar_lea.hbm %s1839_s10, 1024  ;;  %p1451_p4 = scmp.lt.u32.totalorder %s1839_s10, %s2157_s0 }
  0x63   : > { %p1446_p9 = scmp.ne.s32.totalorder %s1839_s10, %s1445_s18  ;;  %p1452_p6 = scmp.lt.u32.totalorder %s1450_s21, %s1445_s18 }
  0x64   : > { %p1454_p10 = scmp.lt.u32.totalorder %s1445_s18, %s1839_s10 }
  0x65   : > { %p1448_p0 = pnand %p1447_p12, %p1446_p9  ;;  %p1453_p8 = por %p1452_p6, %p1451_p4 }
  0x67   : > { %p1449_p2 = pneg %p1448_p0  ;;  %p1455_p1 = por %p1454_p10, %p1453_p8 }
  0x69   : > { %p1456_p7 = pnand %p1455_p1, %p1449_p2 }
  0x6b   : > { %1459 = shalt.err (!%p1456_p7)
}
  0x6c   : > { %s1460_s12 = scalar_lea.vmem %s1847_s13, 1024  ;;  %s1645_s8 = smov [#allocation2]  }
  0x6d   : > { %p1461_p9 = scmp.ne.s32.totalorder %s1847_s13, %s1460_s12  ;;  %s1465_s17 = sshll.u32 %s1645_s8, 4  ;;  %s1466_s17 = int_to_ptr.vmem [resolvable:$false] %s1465_s17 }
  0x6e   : > { %s1467_s30 = scalar_lea.vmem %s1466_s17, 2048  ;;  %p1468_p3 = scmp.lt.s32.totalorder %s1847_s13, %s1466_s17 }
  0x6f   : > { %p1463_p0 = pnand %p1461_p9, %p1447_p12  ;;  %p1469_p4 = scmp.lt.s32.totalorder %s1467_s30, %s1460_s12 }
  0x71   : > { %p1464_p5 = pneg %p1463_p0  ;;  %p1470_p6 = por %p1469_p4, %p1468_p3 }
  0x73   : > { %p1471_p8 = pnand %p1470_p6, %p1464_p5 }
  0x75   : > { %1474 = shalt.err (!%p1471_p8)
}
  0x76   : > { %1253 = dma.hbm_to_vmem [thread:$0]  (!%p1843_p11), %s1839_s10, 1024, %s1847_s13, %s1849_s5, %s2133_s15, %s2133_s15, %s2134_s16  }
  0x77   : > { %s44_s11 = sadd.s32 1, %s1619_s23  ;;  %s34_s18 = sadd.s32 1, %s1631_s26 }
  0x78   : > { %p35_p3 = scmp.ge.s32.totalorder %s34_s18, 2  ;;  %s72_s21 = sadd.s32 1, %s1607_s20 }
  0x79   : > { %p79_p5 = scmp.ne.s32.totalorder %s1607_s20, %s1603_s19  ;;  %s252_s14 = sand.u32 1, %s1607_s20  }
  0x7a   : > { %s2197_s18 = smov (%p35_p3, %s34_s18), 0  ;;  %s2199_s25 = smov (!%p35_p3, %s37_s25), %s1635_s27 }
  0x7b   : > { %2159 = sst [smem:[#allocation21_spill]] %s2197_s18  ;;  %s68_s12 = ssub.s32 %s1631_s26, %s2197_s18 }
  0x7c   : > { %s250_s8 = sand.u32 1, %s1639_s28   ;;  %p39_p12 = scmp.ge.s32.totalorder %s2199_s25, 2 }
  0x7d   : > { %p1896_p11 = por %p174_p13, %p79_p5  ;;  %p2162_p2 = scmp.eq.s32.totalorder %s1639_s28, 0 }
  0x7e   : > { %s1008_s5 = sshll.u32 %s252_s14, 5  ;;  %s2201_s25 = smov (%p39_p12, %s2199_s25), 0 }
  0x7f   : > { %s2160_s10 = scalar_select %p1896_p11, 1, 0 }
  0x80   : > { %p1902_p10 = por %p79_p5, %p2162_p2  ;;  %s1009_s17 = sshll.u32 %s1631_s26, 3 }
  0x81   : > { %2161 = sst [smem:[#allocation22_spill]] %s2160_s10  ;;  %s41_s30 = ssub.s32 %s1635_s27, %s2201_s25 }
  0x82   : > { %s1010_s15 = sshll.u32 %s1635_s27, 4  ;;  %p42_p1 = scmp.eq.s32.totalorder %s41_s30, 0 }
  0x83   : > { %s69_s16 = sor.u32 %s68_s12, %s41_s30  ;;  %s260_s0 = sadd.s32 %s1010_s15, %s1009_s17 }
  0x84   : > { %p70_p13 = scmp.eq.s32.totalorder %s69_s16, 0  ;;  %s1011_s18 = sshll.u32 %s260_s0, 6 }
  0x85   : > { %s1913_s2 = scalar_select %p42_p1, %s1619_s23, %s44_s11  }
  0x86   : > { %s1916_s4 = scalar_select %p70_p13, %s1607_s20, %s72_s21  }
  0x87   : > { %s254_s10 = scalar_lea.vmem [#allocation5], %s1008_s5  ;;  %s1921_s7 = scalar_lea.hbm %s2119_s1, %s1011_s18 }
  0x88   : > { %s263_s24 = sshll.u32 %s254_s10, 4  ;;  %p2164_p7 = scmp.lt.s32.totalorder %s1639_s28, 4  ;;  %s1923_s24 = int_to_ptr.vmem [resolvable:$true] %s263_s24 }
  0x89   : > { %s1933_s0 = scalar_lea.sflag [#allocation6], %s250_s8  ;;  %s1475_s16 = scalar_lea.hbm %s1921_s7, 512 }
  0x8a   : > { %p1929_p9 = pnand %p2164_p7, %p1902_p10  ;;  %p1476_p0 = scmp.ne.s32.totalorder %s1921_s7, %s1475_s16 }
  0x8b   : > { %s1480_s18 = scalar_lea.hbm %s2119_s1, 2048  ;;  %p1481_p3 = scmp.lt.u32.totalorder %s1921_s7, %s2119_s1 }
  0x8c   : > { %p1477_p4 = pneg %p1929_p9  ;;  %p1482_p5 = scmp.lt.u32.totalorder %s1480_s18, %s1475_s16 }
  0x8d   : > { %p1484_p2 = scmp.lt.u32.totalorder %s1475_s16, %s1921_s7 }
  0x8e   : > { %p1478_p6 = pnand %p1477_p4, %p1476_p0  ;;  %p1483_p12 = por %p1482_p5, %p1481_p3 }
  0x90   : > { %p1479_p8 = pneg %p1478_p6  ;;  %p1485_p10 = por %p1484_p2, %p1483_p12 }
  0x92   : > { %p1486_p1 = pnand %p1485_p10, %p1479_p8 }
  0x94   : > { %1489 = shalt.err (!%p1486_p1)
}
  0x95   : > { %s1490_s8 = scalar_lea.vmem %s1923_s24, 512  ;;  %s1646_s10 = smov [#allocation5]  }
  0x96   : > { %p1491_p13 = scmp.ne.s32.totalorder %s1923_s24, %s1490_s8  ;;  %s1495_s13 = sshll.u32 %s1646_s10, 4  ;;  %s1496_s13 = int_to_ptr.vmem [resolvable:$false] %s1495_s13 }
  0x97   : > { %s1497_s5 = scalar_lea.vmem %s1496_s13, 1024  ;;  %p1498_p6 = scmp.lt.s32.totalorder %s1923_s24, %s1496_s13 }
  0x98   : > { %p1493_p7 = pnand %p1491_p13, %p1477_p4  ;;  %p1499_p3 = scmp.lt.s32.totalorder %s1497_s5, %s1490_s8 }
  0x9a   : > { %p1494_p0 = pneg %p1493_p7  ;;  %p1500_p5 = por %p1499_p3, %p1498_p6 }
  0x9c   : > { %p1501_p12 = pnand %p1500_p5, %p1494_p0 }
  0x9e   : > { %1504 = shalt.err (!%p1501_p12)
}
  0x9f   : > { %s2166_s17 = smov 4   ;;  %s2167_s30 = smov 64  }
  0xa0   : > { %1256 = dma.hbm_to_vmem [thread:$0]  (!%p1929_p9), %s1921_s7, 512, %s1923_s24, %s1933_s0, %s2167_s30, %s2167_s30, %s2166_s17  }
  0xa1   : > { %p2168_p4 = scmp.ne.s32.totalorder %s2153_s9, 0 }
  0xa2   : > { %s277_s14 = sand.u32 (!%p2168_p4), 1, %s1615_s22   ;;  %p2169_p8 = scmp.ne.s32.totalorder (!%p2168_p4), %s2148_s6, 0 }
  0xa3   : > { %275 = sbr.rel (%p2168_p4) target bundleno = 930 (0x3a2), region = 40  ;;  %s1013_s16 = sshll.u32 (!%p2168_p4), %s277_s14, 6 }
  0xa4   : > { %s278_s3 = scalar_lea.sflag (!%p2168_p4), [#allocation3], %s277_s14  ;;  %s1967_s11 = scalar_lea.vmem (!%p2168_p4), [#allocation2], %s1013_s16 }
  0xaa   : > { %1578 = dma.done.wait (%p2169_p8), %s278_s3, 1024  }
  0xab   : > { %1580 = vsyncadd (%p2169_p8), %s278_s3, 4294966272  ;;  %s2170_s15 = sld [smem:[#allocation19_spill]]  ;;  %s286_s24 = sand.u32 1, %s1734_s29  }
  0xac   : > { %s288_s7 = sand.u32 1, %s1603_s19   ;;  %s287_s0 = scalar_lea.sflag [#allocation6], %s286_s24 }
  0xad   : > { %s1977_s9 = sshll.u32 %s288_s7, 5 }
  0xae   : > { %s1980_s18 = scalar_lea.vmem [#allocation5], %s1977_s9 }
  0xb1   : > { %p2171_p9 = scmp.ne.s32.totalorder %s2170_s15, 0 }
  0xb3   : > { %1582 = dma.done.wait (%p2171_p9), %s287_s0, 512  }
  0xb4   : > { %1584 = vsyncadd (%p2171_p9), %s287_s0, 4294966784  ;;  %p2172_p2 = scmp.eq.s32.totalorder %s1734_s29, 0 }
  0xb6   : > { %1586 = dma.done.wait (%p2172_p2), [#allocation6], 1024   ;;  %p2173_p10 = pmov %p2172_p2 }
  0xb7   : > { %p2174_p1 = pmov %p2172_p2 }
  0xb8   : > { %1588 = vsyncadd (%p2173_p10), [#allocation6], 4294966272 }
  0xb9   : > { %1590 = dma.done.wait (%p2174_p1), [#allocation9], 1024   ;;  %p2175_p13 = pmov %p2174_p1 }
  0xba   : > { %v1361_v0 = vld [vmem:[#allocation7] sm:$0xff]   ;;  %v1362_v1 = vld [vmem:[#allocation7 + $0x8] sm:$0xff]   ;;  %v1363_v2 = vld [vmem:[#allocation7 + $0x10] sm:$0xff]   ;;  %s2176_s21 = sld [smem:[#allocation25_spill]]  ;;  %s2177_s12 = sld [smem:[#allocation17_spill]] }
  0xbb   : > { %1592 = vsyncadd (%p2175_p13), [#allocation9], 4294966272  ;;  %1133 = vmatprep.subr.bf16.mxu0 %v1361_v0  ;;  %v1364_v3 = vld [vmem:[#allocation7 + $0x18] sm:$0xff]   ;;  %v1369_v4 = vld [vmem:[%s1967_s11] sm:$0xff]   ;;  %s2178_s8 = sld [smem:[#allocation18_spill]]  ;;  %s329_s5 = scalar_lea.vmem [#allocation10], %s1977_s9 }
  0xbc   : > { %1134 = vmatpush3.bf16.msra.mxu0 %v1361_v0  ;;  %1149 = vmatprep.mubr.bf16.mxu0 %v1369_v4  ;;  %v1365_v5 = vld [vmem:[#allocation7 + $0x20] sm:$0xff]   ;;  %v1366_v6 = vld [vmem:[#allocation7 + $0x28] sm:$0xff]   ;;  %v1367_v7 = vld [vmem:[#allocation7 + $0x30] sm:$0xff]   ;;  %s867_s14 = sshll.u32 %s329_s5, 4  ;;  %s2180_s15 = sld [smem:[#allocation27_spill]]  ;;  %s2048_s14 = int_to_ptr.vmem [resolvable:$true] %s867_s14 }
  0xbd   : > { %1135 = vmatprep.subr.bf16.mxu0 %v1362_v1  ;;  %v1368_v8 = vld [vmem:[#allocation7 + $0x38] sm:$0xff]   ;;  %v1370_v9 = vld [vmem:[%s1967_s11 + $0x8] sm:$0xff]   ;;  %v1371_v10 = vld [vmem:[%s1967_s11 + $0x10] sm:$0xff]   ;;  %s2057_s9 = scalar_lea.sflag [#allocation4], %s288_s7  ;;  %s1505_s0 = scalar_lea.vmem %s2048_s14, 512 }
  0xbe   : > { %v1372_v11 = vld [vmem:[%s1967_s11 + $0x18] sm:$0xff]   ;;  %v1373_v12 = vld [vmem:[%s1967_s11 + $0x20] sm:$0xff]   ;;  %v1374_v13 = vld [vmem:[%s1967_s11 + $0x28] sm:$0xff]   ;;  %p1506_p7 = scmp.ne.s32.totalorder %s2048_s14, %s1505_s0 }
  0xbf   : > { %v1375_v14 = vld [vmem:[%s1967_s11 + $0x30] sm:$0xff]   ;;  %v1376_v15 = vld [vmem:[%s1967_s11 + $0x38] sm:$0xff]   ;;  %v1377_v16 = vld [vmem:[%s1980_s18] sm:$0xff]  }
  0xc0   : > { %1136 = vmatpush3.bf16.msra.mxu0 %v1362_v1  ;;  %1181 = vmatprep.mubr.bf16.mxu1 %v1377_v16  ;;  %v2003_v17 = vld [vmem:[#allocation8] sm:$0xff]   ;;  %v2005_v18 = vld [vmem:[#allocation8 + $0x8] sm:$0xff]   ;;  %v2010_v19 = vld [vmem:[#allocation8 + $0x10] sm:$0xff]   ;;  %s1056_s10 = sshll.u32 %s2177_s12, 3  ;;  %p1507_p0 = pnand %p1506_p7, %p1896_p11 }
  0xc1   : > { %1137 = vmatprep.subr.bf16.mxu0 %v1363_v2  ;;  %v2014_v20 = vld [vmem:[#allocation8 + $0x18] sm:$0xff]   ;;  %v2018_v21 = vld [vmem:[#allocation8 + $0x20] sm:$0xff]   ;;  %v2022_v22 = vld [vmem:[#allocation8 + $0x28] sm:$0xff]   ;;  %s1057_s13 = sshll.u32 %s2178_s8, 4 }
  0xc2   : > { %v1018_v24 = vld [vmem:[%s2176_s21] ss:$0 sm:$0xff]  ;;  %v1378_v0 = vld [vmem:[%s1980_s18 + $0x8] sm:$0xff]   ;;  %v1379_v1 = vld [vmem:[%s1980_s18 + $0x10] sm:$0xff]   ;;  %s864_s17 = sadd.s32 %s1057_s13, %s1056_s10  ;;  %p1508_p6 = pneg %p1507_p0 }
  0xc3   : > { %v1388_v4 = vld [vmem:[#allocation8 + $0x38] sm:$0xff]   ;;  %s1058_s16 = sshll.u32 %s864_s17, 6 }
  0xc4   : > { %1138 = vmatpush3.bf16.msra.mxu0 %v1363_v2  ;;  %v1380_v2 = vld [vmem:[%s1980_s18 + $0x18] sm:$0xff]   ;;  %s2053_s24 = scalar_lea.hbm %s2180_s15, %s1058_s16  ;;  %s1647_s18 = smov [#allocation10]  }
  0xc5   : > { %1139 = vmatprep.subr.bf16.mxu0 %v1364_v3  ;;  %s1509_s29 = sshll.u32 %s1647_s18, 4  ;;  %s1510_s29 = int_to_ptr.vmem [resolvable:$false] %s1509_s29 }
  0xc6   : > { %s1511_s6 = scalar_lea.vmem %s1510_s29, 1024  ;;  %p1512_p3 = scmp.lt.s32.totalorder %s2048_s14, %s1510_s29 }
  0xc7   : > { %p1513_p5 = scmp.lt.s32.totalorder %s1511_s6, %s1505_s0 }
  0xc8   : > { %1140 = vmatpush3.bf16.msra.mxu0 %v1364_v3  ;;  %v1387_v3 = vld [vmem:[#allocation8 + $0x30] sm:$0xff]  }
  0xc9   : > { %1141 = vmatprep.subr.bf16.mxu0 %v1365_v5  ;;  %p1514_p12 = por %p1513_p5, %p1512_p3 }
  0xcb   : > { %p1515_p4 = pnand %p1514_p12, %p1508_p6 }
  0xcc   : > { %1142 = vmatpush3.bf16.msra.mxu0 %v1365_v5 }
  0xcd   : > { %1143 = vmatprep.subr.bf16.mxu0 %v1366_v6 }
  0xd0   : > { %1144 = vmatpush3.bf16.msra.mxu0 %v1366_v6 }
  0xd1   : > { %1145 = vmatprep.subr.bf16.mxu0 %v1367_v7 }
  0xd4   : > { %1146 = vmatpush3.bf16.msra.mxu0 %v1367_v7 }
  0xd5   : > { %1147 = vmatprep.subr.bf16.mxu0 %v1368_v8 }
  0xd8   : > { %1148 = vmatpush3.bf16.msra.mxu0 %v1368_v8 }
  0xd9   : > { %1189 = vmatprep.subr.bf16.mxu0 %v2003_v17 }
  0xdb   : > { %1150 = vmatmul.mubr.bf16.vlgmr.msra.gmra.mrb[0].mxu0 %v1370_v9 }
  0xdc   : > { %1153 = vmatprep.mubr.bf16.mxu0 %v1371_v10  ;;  %1190 = vmatpush3.bf16.msra.mxu0 %v2003_v17 }
  0xdd   : > { %1191 = vmatprep.subr.bf16.mxu0 %v2005_v18 }
  0xe0   : > { %1192 = vmatpush3.bf16.msra.mxu0 %v2005_v18 }
  0xe1   : > { %1193 = vmatprep.subr.bf16.mxu0 %v2010_v19 }
  0xe3   : > { %1154 = vmatmul.mubr.bf16.gmra.mrb[4].mxu0 %v1372_v11 }
  0xe4   : > { %1157 = vmatprep.mubr.bf16.mxu0 %v1373_v12  ;;  %1194 = vmatpush3.bf16.msra.mxu0 %v2010_v19 }
  0xe5   : > { %1195 = vmatprep.subr.bf16.mxu0 %v2014_v20 }
  0xe8   : > { %1196 = vmatpush3.bf16.msra.mxu0 %v2014_v20 }
  0xe9   : > { %1197 = vmatprep.subr.bf16.mxu0 %v2018_v21 }
  0xeb   : > { %1158 = vmatmul.mubr.bf16.gmra.mrb[8].mxu0 %v1374_v13 }
  0xec   : > { %1161 = vmatprep.mubr.bf16.mxu0 %v1375_v14  ;;  %1198 = vmatpush3.bf16.msra.mxu0 %v2018_v21 }
  0xed   : > { %1199 = vmatprep.subr.bf16.mxu0 %v2022_v22 }
  0xf0   : > { %1200 = vmatpush3.bf16.msra.mxu0 %v2022_v22 }
  0xf1   : > { %1201 = vmatprep.subr.bf16.mxu0 %v1387_v3 }
  0xf3   : > { %1162 = vmatmul.mubr.bf16.gmra.mrb[12].mxu0 %v1376_v15 }
  0xf4   : > { %1202 = vmatpush3.bf16.msra.mxu0 %v1387_v3 }
  0xf5   : > { %1203 = vmatprep.subr.bf16.mxu0 %v1388_v4 }
  0xf8   : > { %1204 = vmatpush3.bf16.msra.mxu0 %v1388_v4 }
 0x1ae   : > { %v1151_v23 = vpop.f32.mrb[0].mxu0 }
 0x1af   : > { %v502_v25 = vpop.f32.mrb[1].mxu0  ;;  %v511_v27 = vadd.f32 %v1151_v23, %v1018_v24 }
 0x1b0   : > { %v1152_v26 = vpop.f32.mrb[2].mxu0  ;;  %v503_v30 = vadd.f32 %v1018_v24, %v502_v25 }
 0x1b1   : > { %v514_v28 = vadd.f32 %v1152_v26, %v1018_v24  ;;  %v505_v29 = vpop.f32.mrb[3].mxu0 }
 0x1b2   : > { %v506_v31 = vadd.f32 %v1018_v24, %v505_v29 }
 0x1b3   : > { %v566_v32 = vpack.c.bf16 %v514_v28, %v511_v27 }
 0x1b4   : > { %v565_v33 = vpack.c.bf16 %v506_v31, %v503_v30 }
 0x1b6   : > { %v1155_v34 = vpop.f32.mrb[4].mxu0  ;;  %1165 = vmatprep.subr.bf16.mxu1 %v565_v33 }
 0x1b7   : > { %v518_v35 = vpop.f32.mrb[5].mxu0  ;;  %1166 = vmatpush3.bf16.msra.mxu1 %v565_v33  ;;  %v527_v37 = vadd.f32 %v1155_v34, %v1018_v24 }
 0x1b8   : > { %v1156_v36 = vpop.f32.mrb[6].mxu0  ;;  %1167 = vmatprep.subr.bf16.mxu1 %v566_v32  ;;  %v519_v40 = vadd.f32 %v1018_v24, %v518_v35 }
 0x1b9   : > { %v530_v38 = vadd.f32 %v1156_v36, %v1018_v24  ;;  %v521_v39 = vpop.f32.mrb[7].mxu0 }
 0x1ba   : > { %v522_v41 = vadd.f32 %v1018_v24, %v521_v39 }
 0x1bb   : > { %v568_v42 = vpack.c.bf16 %v530_v38, %v527_v37  ;;  %1168 = vmatpush3.bf16.msra.mxu1 %v566_v32 }
 0x1bc   : > { %v567_v43 = vpack.c.bf16 %v522_v41, %v519_v40 }
 0x1be   : > { %v1159_v44 = vpop.f32.mrb[8].mxu0  ;;  %1169 = vmatprep.subr.bf16.mxu1 %v567_v43 }
 0x1bf   : > { %v534_v45 = vpop.f32.mrb[9].mxu0  ;;  %1170 = vmatpush3.bf16.msra.mxu1 %v567_v43  ;;  %v543_v47 = vadd.f32 %v1159_v44, %v1018_v24 }
 0x1c0   : > { %v1160_v46 = vpop.f32.mrb[10].mxu0  ;;  %1171 = vmatprep.subr.bf16.mxu1 %v568_v42  ;;  %v535_v50 = vadd.f32 %v1018_v24, %v534_v45 }
 0x1c1   : > { %v546_v48 = vadd.f32 %v1160_v46, %v1018_v24  ;;  %v537_v49 = vpop.f32.mrb[11].mxu0 }
 0x1c2   : > { %v538_v51 = vadd.f32 %v1018_v24, %v537_v49 }
 0x1c3   : > { %v570_v52 = vpack.c.bf16 %v546_v48, %v543_v47  ;;  %1172 = vmatpush3.bf16.msra.mxu1 %v568_v42 }
 0x1c4   : > { %v569_v53 = vpack.c.bf16 %v538_v51, %v535_v50 }
 0x1c6   : > { %v1163_v54 = vpop.f32.mrb[12].mxu0  ;;  %1173 = vmatprep.subr.bf16.mxu1 %v569_v53 }
 0x1c7   : > { %v550_v55 = vpop.f32.mrb[13].mxu0  ;;  %1174 = vmatpush3.bf16.msra.mxu1 %v569_v53  ;;  %v559_v57 = vadd.f32 %v1163_v54, %v1018_v24 }
 0x1c8   : > { %v1164_v56 = vpop.f32.mrb[14].mxu0  ;;  %1175 = vmatprep.subr.bf16.mxu1 %v570_v52  ;;  %v551_v60 = vadd.f32 %v1018_v24, %v550_v55 }
 0x1c9   : > { %v562_v58 = vadd.f32 %v1164_v56, %v1018_v24  ;;  %v553_v59 = vpop.f32.mrb[15].mxu0 }
 0x1ca   : > { %v554_v61 = vadd.f32 %v1018_v24, %v553_v59 }
 0x1cb   : > { %v572_v62 = vpack.c.bf16 %v562_v58, %v559_v57  ;;  %1176 = vmatpush3.bf16.msra.mxu1 %v570_v52 }
 0x1cc   : > { %v571_v63 = vpack.c.bf16 %v554_v61, %v551_v60 }
 0x1ce   : > { %1177 = vmatprep.subr.bf16.mxu1 %v571_v63 }
 0x1cf   : > { %1178 = vmatpush3.bf16.msra.mxu1 %v571_v63 }
 0x1d0   : > { %1179 = vmatprep.subr.bf16.mxu1 %v572_v62 }
 0x1d3   : > { %1180 = vmatpush3.bf16.msra.mxu1 %v572_v62 }
 0x1d4   : > { %1213 = vmatprep.subr.bf16.mxu1 %v2003_v17 }
 0x1d6   : > { %1182 = vmatmul.mubr.bf16.vlgmr.msra.gmra.mrb[0].mxu1 %v1378_v0 }
 0x1d7   : > { %1185 = vmatprep.mubr.bf16.mxu1 %v1379_v1  ;;  %1221 = vmatpush3.bf16.msra.mxu1 %v2003_v17 }
 0x1d8   : > { %1214 = vmatprep.subr.bf16.mxu1 %v2005_v18 }
 0x1db   : > { %1222 = vmatpush3.bf16.msra.mxu1 %v2005_v18 }
 0x1dc   : > { %1215 = vmatprep.subr.bf16.mxu1 %v2010_v19 }
 0x1de   : > { %1186 = vmatmul.mubr.bf16.gmra.mrb[4].mxu1 %v1380_v2 }
 0x1df   : > { %1223 = vmatpush3.bf16.msra.mxu1 %v2010_v19 }
 0x1e0   : > { %1216 = vmatprep.subr.bf16.mxu1 %v2014_v20 }
 0x1e3   : > { %1224 = vmatpush3.bf16.msra.mxu1 %v2014_v20 }
 0x1e4   : > { %1217 = vmatprep.subr.bf16.mxu1 %v2018_v21 }
 0x1e7   : > { %1225 = vmatpush3.bf16.msra.mxu1 %v2018_v21 }
 0x1e8   : > { %1218 = vmatprep.subr.bf16.mxu1 %v2022_v22 }
 0x1eb   : > { %1226 = vmatpush3.bf16.msra.mxu1 %v2022_v22 }
 0x1ec   : > { %1219 = vmatprep.subr.bf16.mxu1 %v1387_v3 }
 0x1ef   : > { %1227 = vmatpush3.bf16.msra.mxu1 %v1387_v3 }
 0x1f0   : > { %1220 = vmatprep.subr.bf16.mxu1 %v1388_v4 }
 0x1f3   : > { %1228 = vmatpush3.bf16.msra.mxu1 %v1388_v4 }
 0x2a9   : > { %v1183_v5 = vpop.f32.mrb[0].mxu1 }
 0x2aa   : > { %v639_v6 = vpop.f32.mrb[1].mxu1  ;;  %v672_v8 = vmax.f32 %v1183_v5, 0.0 }
 0x2ab   : > { %v1184_v7 = vpop.f32.mrb[2].mxu1  ;;  %v670_v11 = vmax.f32 %v639_v6, 0.0 }
 0x2ac   : > { %v673_v9 = vmax.f32 %v1184_v7, 0.0  ;;  %v642_v10 = vpop.f32.mrb[3].mxu1 }
 0x2ad   : > { %v671_v12 = vmax.f32 %v642_v10, 0.0 }
 0x2ae   : > { %v679_v13 = vpack.c.bf16 %v673_v9, %v672_v8 }
 0x2af   : > { %v678_v14 = vpack.c.bf16 %v671_v12, %v670_v11 }
 0x2b1   : > { %v1187_v15 = vpop.f32.mrb[4].mxu1  ;;  %1205 = vmatprep.mubr.bf16.mxu0 %v678_v14 }
 0x2b2   : > { %v655_v16 = vpop.f32.mrb[5].mxu1  ;;  %1206 = vmatmul.mubr.bf16.vlgmr.msra.gmra.mrb[16].mxu0 %v679_v13  ;;  %v676_v18 = vmax.f32 %v1187_v15, 0.0 }
 0x2b3   : > { %v1188_v17 = vpop.f32.mrb[6].mxu1  ;;  %v674_v21 = vmax.f32 %v655_v16, 0.0 }
 0x2b4   : > { %v677_v19 = vmax.f32 %v1188_v17, 0.0  ;;  %v658_v20 = vpop.f32.mrb[7].mxu1 }
 0x2b5   : > { %v675_v22 = vmax.f32 %v658_v20, 0.0 }
 0x2b6   : > { %v681_v23 = vpack.c.bf16 %v677_v19, %v676_v18 }
 0x2b7   : > { %v680_v24 = vpack.c.bf16 %v675_v22, %v674_v21 }
 0x2b9   : > { %1209 = vmatprep.mubr.bf16.mxu1 %v680_v24 }
 0x2ba   : > { %1210 = vmatmul.mubr.bf16.vlgmr.msra.gmra.mrb[8].mxu1 %v681_v23 }
 0x385   : > { %v1207_v25 = vpop.f32.mrb[16].mxu0 }
 0x386   : > { %v780_v26 = vpop.f32.mrb[17].mxu0 }
 0x387   : > { %v1208_v27 = vpop.f32.mrb[18].mxu0 }
 0x388   : > { %v1078_v28 = vpack.c.bf16 %v1208_v27, %v1207_v25  ;;  %v783_v29 = vpop.f32.mrb[19].mxu0 }
 0x389   : > { %v1073_v30 = vpack.c.bf16 %v783_v29, %v780_v26 }
 0x38a   : > { %1090 = vst [vmem:[%s329_s5 + $0x8] sm:$0xff] %v1078_v28  }
 0x38b   : > { %1074 = vst [vmem:[%s329_s5] sm:$0xff] %v1073_v30  }
 0x38d   : > { %v1211_v31 = vpop.f32.mrb[8].mxu1 }
 0x38e   : > { %v796_v32 = vpop.f32.mrb[9].mxu1 }
 0x38f   : > { %v1212_v33 = vpop.f32.mrb[10].mxu1 }
 0x390   : > { %v1088_v34 = vpack.c.bf16 %v1212_v33, %v1211_v31  ;;  %v799_v35 = vpop.f32.mrb[11].mxu1 }
 0x391   : > { %v1083_v36 = vpack.c.bf16 %v799_v35, %v796_v32 }
 0x392   : > { %1092 = vst [vmem:[%s329_s5 + $0x18] sm:$0xff] %v1088_v34  }
 0x393   : > { %1091 = vst [vmem:[%s329_s5 + $0x10] sm:$0xff] %v1083_v36  }
 0x394   : > { %1518 = shalt.err (!%p1515_p4)
}
 0x395   : > { %s1519_s7 = scalar_lea.hbm %s2053_s24, 512  ;;  %s1523_s8 = scalar_lea.hbm %s2180_s15, 2048 }
 0x396   : > { %p1520_p8 = scmp.ne.s32.totalorder %s2053_s24, %s1519_s7  ;;  %p1524_p10 = scmp.lt.u32.totalorder %s2053_s24, %s2180_s15 }
 0x397   : > { %p1525_p1 = scmp.lt.u32.totalorder %s1523_s8, %s1519_s7  ;;  %p1527_p7 = scmp.lt.u32.totalorder %s1519_s7, %s2053_s24 }
 0x398   : > { %p1521_p9 = pnand %p1520_p8, %p1896_p11 }
 0x399   : > { %p1526_p13 = por %p1525_p1, %p1524_p10 }
 0x39a   : > { %p1522_p2 = pneg %p1521_p9 }
 0x39b   : > { %p1528_p0 = por %p1527_p7, %p1526_p13 }
 0x39d   : > { %p1529_p6 = pnand %p1528_p0, %p1522_p2 }
 0x39f   : > { %1532 = shalt.err (!%p1529_p6)
}
 0x3a0   : > { %s1648_s5 = smov 64   ;;  %s1649_s17 = smov 4  }
 0x3a1   : > { %1241 = dma.vmem_to_hbm [thread:$0]  (%p1896_p11), %s2048_s14, 512, %s2053_s24, %s2057_s9, %s1648_s5, %s1648_s5, %s1649_s17  }
 0x3a2 PF: > { %s2181_s16 = sld [smem:[#allocation16_spill]]  ;;  %s2182_s3 = sld [smem:[#allocation20_spill]] }
 0x3a3   : > { %p1266_p3 = scmp.ge.s32.totalorder %s1639_s28, 2 }
 0x3a8   : > { %s882_s11 = sand.u32 1, %s2181_s16   ;;  %p2183_p5 = scmp.ne.s32.totalorder %s2182_s3, 0 }
 0x3a9   : > { %s883_s0 = scalar_lea.sflag [#allocation4], %s882_s11 }
 0x3aa   : > { %p1258_p12 = pnand %p1266_p3, %p2183_p5 }
 0x3ac   : > { %1594 = dma.done.wait (!%p1258_p12), %s883_s0, 512  }
 0x3ad   : > { %1596 = vsyncadd (!%p1258_p12), %s883_s0, 4294966784  ;;  %s25_s28 = sadd.s32 1, %s1639_s28   ;;  %s2184_s30 = sld [smem:[#allocation21_spill]] }
 0x3ae   : > { %p22_p4 = scmp.ge.s32.totalorder %s25_s28, 6   ;;  %s2185_s14 = smov %s2201_s25 }
 0x3af   : > { %s2186_s18 = smov %s1603_s19  ;;  %s2187_s19 = smov %s1607_s20 }
 0x3b0   : > { %s2188_s20 = smov %s1916_s4  ;;  %s2189_s21 = smov %s1615_s22 }
 0x3b1   : > { %s2190_s22 = smov %s1619_s23  ;;  %s2191_s23 = smov %s1913_s2 }
 0x3b2   : > { %s2192_s24 = smov %s1631_s26  ;;  %s2193_s25 = smov %s1635_s27 }
 0x3b3   : > { %s2194_s26 = smov %s2184_s30  ;;  %s2195_s27 = smov %s2185_s14 }
 0x3b4   :  { %24 = sbr.rel (!%p22_p4) target bundleno = 18 (0x12), region = 106 }
 0x3bb   :  { %888 = vsyncpa [#allocation3], 1 }
 0x3bc   :  { %890 = vsyncpa [#allocation3 + $0x1], 1 }
 0x3bd   :  { %891 = vsyncpa [#allocation6], 1 }
 0x3be   :  { %893 = vsyncpa [#allocation6 + $0x1], 1 }
 0x3bf   :  { %894 = vsyncpa [#allocation9], 1 }
 0x3c0   :  { %895 = vsyncpa [#allocation4], 1 }
 0x3c1   :  { %897 = vsyncpa [#allocation4 + $0x1], 1 }

</bundles_post_ra>
